<compile_context>
chip_gen: v6e
topology: v6e:2x2x1
jax: 0.10.0
libtpu: 0.0.40
codegen_flags: <defaults>
</compile_context>

<pallas_src>
import functools

import jax
import jax.numpy as jnp
from jax.experimental import pallas as pl
from jax.experimental.pallas import tpu as pltpu

NODE_SIZE = 64        # GraphNetConfig.node_size
NUM_EDGE_TYPES = 8    # Space_Relationship.number (synthetic choice)
OUT_SIZE = 6          # bbox location + size
MAX_TILE_E = 4096     # row tile upper bound (few MiB double-buffered, fits every chip)
MIN_GRID_STEPS = 4    # aim for >= 4 grid steps so v7x's 2 TensorCores both get work


def _round_up(x, m):
    return ((x + m - 1) // m) * m


def _locsize_kernel(e_ref, nv_hbm, wi_ref, bi_ref, wbeu_ref, beff_ref, o_ref,
                    nbuf, sem, *, rem):
    """One row-tile of LocationSize_All.

    e_ref   : [tile_e, 8]   f32  (edge_vectors tile, auto-pipelined)
    nv_hbm  : [E+1, 64]     f32  raw HBM ref (memory_space=pl.ANY)
    wi_ref  : [8, 64]       bf16 EdgeInitializer weight
    bi_ref  : [1, 64]       f32  EdgeInitializer bias
    wbeu_ref: [128, 6]      bf16 merged f_box weight for [h_e | h_u]
    beff_ref: [1, 6]        f32  b_box + node_vectors[0] @ W_box[64:128]
    o_ref   : [tile_e, 6]   f32  output tile
    nbuf    : [tile_e, 64]  f32  VMEM scratch for the h_u rows
    sem     : DMA semaphore
    rem     : static number of valid rows in the last tile
    """
    i = pl.program_id(0)
    tile_e = nbuf.shape[0]
    start = i * tile_e + 1          # +1 row offset: h_u = node_vectors[1:]

    def node_copy(rows):
        return pltpu.make_async_copy(
            nv_hbm.at[pl.ds(start, rows)], nbuf.at[pl.ds(0, rows)], sem)

    all_full = (rem == tile_e)      # static Python bool
    last = pl.num_programs(0) - 1

    # Kick off the h_u DMA so it overlaps with the edge-init matmul below.
    if all_full:
        node_copy(tile_e).start()
    else:
        @pl.when(i < last)
        def _():
            node_copy(tile_e).start()

        @pl.when(i == last)
        def _():
            node_copy(rem).start()   # statically shorter copy: never reads past E+1 rows

    # EdgeInitializer: h_e = tanh(e @ W_init + b_init); bf16 MXU inputs, f32 accumulate.
    h_e = jnp.tanh(
        jnp.dot(e_ref[...].astype(jnp.bfloat16), wi_ref[...],
                preferred_element_type=jnp.float32)
        + bi_ref[...])

    # Wait for the h_u rows.
    if all_full:
        node_copy(tile_e).wait()
    else:
        @pl.when(i < last)
        def _():
            node_copy(tile_e).wait()

        @pl.when(i == last)
        def _():
            node_copy(rem).wait()

    # f_box on concat([h_e, h_v, h_u]); the constant h_v term lives in beff, and the
    # remaining two matmuls are fused into one K=128 MXU dot over [h_e | h_u].
    x = jnp.concatenate(
        [h_e.astype(jnp.bfloat16), nbuf[...].astype(jnp.bfloat16)], axis=-1)
    o_ref[...] = (jnp.dot(x, wbeu_ref[...], preferred_element_type=jnp.float32)
                  + beff_ref[...])


def location_size_all(edge_vectors, node_vectors, params):
    """edge_vectors: [E, NUM_EDGE_TYPES]; node_vectors: [E+1, NODE_SIZE]."""
    E = edge_vectors.shape[0]
    assert node_vectors.shape[0] == E + 1

    edge_vectors = edge_vectors.astype(jnp.float32)
    node_vectors = node_vectors.astype(jnp.float32)

    # Tiny parameter tensors: prep them in the wrapper (negligible HBM traffic).
    w_init = params["w_init"].astype(jnp.bfloat16)                    # [8, 64]
    b_init = params["b_init"].reshape(1, -1).astype(jnp.float32)      # [1, 64]
    w_box = params["w_box"]                                           # [192, 6]
    b_box = params["b_box"]                                           # [6]

    wb_e = w_box[:NODE_SIZE]                    # multiplies h_e
    wb_v = w_box[NODE_SIZE:2 * NODE_SIZE]       # multiplies h_v (constant row)
    wb_u = w_box[2 * NODE_SIZE:]                # multiplies h_u

    # Fold the broadcast h_v = node_vectors[0] term into an effective bias
    # (one 1x64x6 dot in plain JAX) -> no [E,64] h_v stream, no third box matmul.
    b_eff = (b_box + node_vectors[0] @ wb_v).reshape(1, -1).astype(jnp.float32)

    # Merged box weight for the single K=128 matmul over [h_e | h_u].
    wb_eu = jnp.concatenate([wb_e, wb_u], axis=0).astype(jnp.bfloat16)   # [128, 6]

    # Row tiling: big tiles (amortize per-step overhead) but >= MIN_GRID_STEPS steps when
    # E allows it, so the "parallel" grid axis actually feeds both v7x TensorCores.
    tile_e = min(MAX_TILE_E, max(8, _round_up(pl.cdiv(E, MIN_GRID_STEPS), 8)))
    num_tiles = pl.cdiv(E, tile_e)
    rem = E - (num_tiles - 1) * tile_e           # static rows in the last tile

    kernel = functools.partial(_locsize_kernel, rem=rem)

    def row_spec(cols):
        return pl.BlockSpec((tile_e, cols), lambda i: (i, 0))

    def rep_spec(rows, cols):
        return pl.BlockSpec((rows, cols), lambda i: (0, 0))

    return pl.pallas_call(
        kernel,
        out_shape=jax.ShapeDtypeStruct((E, OUT_SIZE), jnp.float32),
        grid=(num_tiles,),
        in_specs=[
            row_spec(NUM_EDGE_TYPES),                     # edge_vectors tile [tile_e, 8] f32
            pl.BlockSpec(memory_space=pl.ANY),            # node_vectors: raw HBM ref (manual DMA)
            rep_spec(NUM_EDGE_TYPES, NODE_SIZE),          # w_init  [8, 64]   bf16
            rep_spec(1, NODE_SIZE),                       # b_init  [1, 64]   f32
            rep_spec(2 * NODE_SIZE, OUT_SIZE),            # wb_eu   [128, 6]  bf16
            rep_spec(1, OUT_SIZE),                        # b_eff   [1, 6]    f32
        ],
        out_specs=row_spec(OUT_SIZE),
        scratch_shapes=[
            pltpu.VMEM((tile_e, NODE_SIZE), jnp.float32),  # h_u landing buffer
            pltpu.SemaphoreType.DMA(()),
        ],
        compiler_params=pltpu.CompilerParams(
            dimension_semantics=("parallel",)),
    )(edge_vectors, node_vectors, w_init, b_init, wb_eu, b_eff)


def init_params(key):
    """Deterministic PyTorch-style uniform(-1/sqrt(fan_in), 1/sqrt(fan_in)) init."""
    k1, k2, k3, k4 = jax.random.split(key, 4)
    lim_i = 1.0 / jnp.sqrt(float(NUM_EDGE_TYPES))
    lim_b = 1.0 / jnp.sqrt(float(3 * NODE_SIZE))
    return {
        # stored transposed relative to torch: (in_features, out_features)
        "w_init": jax.random.uniform(k1, (NUM_EDGE_TYPES, NODE_SIZE),
                                     jnp.float32, -lim_i, lim_i),
        "b_init": jax.random.uniform(k2, (NODE_SIZE,), jnp.float32, -lim_i, lim_i),
        "w_box": jax.random.uniform(k3, (3 * NODE_SIZE, OUT_SIZE),
                                    jnp.float32, -lim_b, lim_b),
        "b_box": jax.random.uniform(k4, (OUT_SIZE,), jnp.float32, -lim_b, lim_b),
    }


def reference(edge_vectors, node_vectors, params):
    """Pure-JAX f32 reference of the PyTorch forward."""
    E = edge_vectors.shape[0]
    h_e = jnp.tanh(edge_vectors @ params["w_init"] + params["b_init"])
    h_v = jnp.broadcast_to(node_vectors[0][None, :], (E, NODE_SIZE))
    h_u = node_vectors[1:]
    concat = jnp.concatenate([h_e, h_v, h_u], axis=1)
    return concat @ params["w_box"] + params["b_box"]


def _run_case(params, key, E):
    ke, kn = jax.random.split(key)
    edge_vectors = jax.random.normal(ke, (E, NUM_EDGE_TYPES), jnp.float32)
    node_vectors = jax.random.normal(kn, (E + 1, NODE_SIZE), jnp.float32)

    out = location_size_all(edge_vectors, node_vectors, params)
    out = jax.block_until_ready(out)

    ref = reference(edge_vectors, node_vectors, params)
    assert out.shape == (E, OUT_SIZE)
    # bf16 MXU operands (f32 accumulation) -> loose tolerance vs the f32 reference.
    assert jnp.allclose(out, ref, atol=2e-2, rtol=2e-2), (
        f"E={E}: max abs err = {jnp.max(jnp.abs(out - ref))}")


if __name__ == "__main__":
    key = jax.random.PRNGKey(0)
    kp, k_small, k_multi = jax.random.split(key, 3)
    params = init_params(kp)

    # Small shape consistent with the module (E edges -> E+1 node vectors); single tile.
    _run_case(params, k_small, E=8)
    # Multi-tile grid with a partial tail tile (exercises the short-copy DMA branch).
    _run_case(params, k_multi, E=83)

    print("KERNEL_OK")
</pallas_src>

<mosaic_0001>
module attributes {stable_mosaic.version = 11 : i64} {
  func.func @_locsize_kernel(%arg0: i32, %arg1: memref<8x8xf32, #tpu.memory_space<vmem>>, %arg2: memref<9x64xf32, #tpu.memory_space<any>>, %arg3: memref<8x64xbf16, #tpu.memory_space<vmem>>, %arg4: memref<1x64xf32, #tpu.memory_space<vmem>>, %arg5: memref<128x6xbf16, #tpu.memory_space<vmem>>, %arg6: memref<1x6xf32, #tpu.memory_space<vmem>>, %arg7: memref<8x6xf32, #tpu.memory_space<vmem>>, %arg8: memref<8x64xf32, #tpu.memory_space<vmem>>, %arg9: memref<!tpu.dma_semaphore, #tpu.memory_space<semaphore_mem>>) attributes {dimension_semantics = [#tpu.dimension_semantics<parallel>], iteration_bounds = array<i64: 1>, scalar_prefetch = 0 : i64, scratch_operands = 2 : i64, tpu.core_type = #tpu.core_type<tc>, window_params = [{transform_indices = @transform_0, window_bounds = array<i64: 8, 8>}, {}, {pipeline_mode = #tpu.pipeline_mode<synchronous>, transform_indices = @transform_2, window_bounds = array<i64: 8, 64>}, {pipeline_mode = #tpu.pipeline_mode<synchronous>, transform_indices = @transform_3, window_bounds = array<i64: 1, 64>}, {pipeline_mode = #tpu.pipeline_mode<synchronous>, transform_indices = @transform_4, window_bounds = array<i64: 128, 6>}, {pipeline_mode = #tpu.pipeline_mode<synchronous>, transform_indices = @transform_5, window_bounds = array<i64: 1, 6>}, {transform_indices = @transform_6, window_bounds = array<i64: 8, 6>}]} {
    %c8_i32 = arith.constant 8 : i32
    %0 = arith.muli %arg0, %c8_i32 : i32
    %c1_i32 = arith.constant 1 : i32
    %1 = arith.addi %0, %c1_i32 : i32
    %c0_i32 = arith.constant 0 : i32
    %2 = tpu.memref_slice %arg2[%1, %c0_i32] : memref<9x64xf32, #tpu.memory_space<any>> -> memref<8x64xf32, #tpu.memory_space<any>>
    %c0_i32_0 = arith.constant 0 : i32
    %c0_i32_1 = arith.constant 0 : i32
    %3 = tpu.memref_slice %arg8[%c0_i32_0, %c0_i32_1] : memref<8x64xf32, #tpu.memory_space<vmem>> -> memref<8x64xf32, #tpu.memory_space<vmem>>
    tpu.enqueue_dma source(%2 : memref<8x64xf32, #tpu.memory_space<any>>) target(%3 : memref<8x64xf32, #tpu.memory_space<vmem>>) target_semaphore(%arg9 : memref<!tpu.dma_semaphore, #tpu.memory_space<semaphore_mem>>)
    %c0 = arith.constant 0 : index
    %c0_2 = arith.constant 0 : index
    %4 = vector.load %arg1[%c0, %c0_2] : memref<8x8xf32, #tpu.memory_space<vmem>>, vector<8x8xf32>
    %5 = arith.truncf %4 : vector<8x8xf32> to vector<8x8xbf16>
    %c0_3 = arith.constant 0 : index
    %c0_4 = arith.constant 0 : index
    %6 = vector.load %arg3[%c0_3, %c0_4] : memref<8x64xbf16, #tpu.memory_space<vmem>>, vector<8x64xbf16>
    %cst = arith.constant dense<0.000000e+00> : vector<8x64xf32>
    %7 = tpu.matmul %5, %6, %cst {dimension_numbers = #tpu.dot_dimension_numbers<[1], [0], [0], [1], [0, 0, 1, 1], [], []>} : vector<8x8xbf16>, vector<8x64xbf16>, vector<8x64xf32> -> vector<8x64xf32>
    %c0_5 = arith.constant 0 : index
    %c0_6 = arith.constant 0 : index
    %8 = vector.load %arg4[%c0_5, %c0_6] : memref<1x64xf32, #tpu.memory_space<vmem>>, vector<1x64xf32>
    %9 = vector.broadcast %8 : vector<1x64xf32> to vector<8x64xf32>
    %10 = arith.addf %7, %9 : vector<8x64xf32>
    %11 = math.tanh %10 : vector<8x64xf32>
    %c0_i32_7 = arith.constant 0 : i32
    %12 = tpu.memref_slice %arg2[%1, %c0_i32_7] : memref<9x64xf32, #tpu.memory_space<any>> -> memref<8x64xf32, #tpu.memory_space<any>>
    %c0_i32_8 = arith.constant 0 : i32
    %c0_i32_9 = arith.constant 0 : i32
    %13 = tpu.memref_slice %arg8[%c0_i32_8, %c0_i32_9] : memref<8x64xf32, #tpu.memory_space<vmem>> -> memref<8x64xf32, #tpu.memory_space<vmem>>
    tpu.wait_dma2 semaphore(%arg9 : memref<!tpu.dma_semaphore, #tpu.memory_space<semaphore_mem>>) src(%12 : memref<8x64xf32, #tpu.memory_space<any>>) dst(%13 : memref<8x64xf32, #tpu.memory_space<vmem>>)
    %14 = arith.truncf %11 : vector<8x64xf32> to vector<8x64xbf16>
    %c0_10 = arith.constant 0 : index
    %c0_11 = arith.constant 0 : index
    %15 = vector.load %arg8[%c0_10, %c0_11] : memref<8x64xf32, #tpu.memory_space<vmem>>, vector<8x64xf32>
    %16 = arith.truncf %15 : vector<8x64xf32> to vector<8x64xbf16>
    %17 = tpu.concatenate %14, %16 in 1 : vector<8x64xbf16>, vector<8x64xbf16> -> vector<8x128xbf16>
    %c0_12 = arith.constant 0 : index
    %c0_13 = arith.constant 0 : index
    %18 = vector.load %arg5[%c0_12, %c0_13] : memref<128x6xbf16, #tpu.memory_space<vmem>>, vector<128x6xbf16>
    %cst_14 = arith.constant dense<0.000000e+00> : vector<8x6xf32>
    %19 = tpu.matmul %17, %18, %cst_14 {dimension_numbers = #tpu.dot_dimension_numbers<[1], [0], [0], [1], [0, 0, 1, 1], [], []>} : vector<8x128xbf16>, vector<128x6xbf16>, vector<8x6xf32> -> vector<8x6xf32>
    %c0_15 = arith.constant 0 : index
    %c0_16 = arith.constant 0 : index
    %20 = vector.load %arg6[%c0_15, %c0_16] : memref<1x6xf32, #tpu.memory_space<vmem>>, vector<1x6xf32>
    %21 = vector.broadcast %20 : vector<1x6xf32> to vector<8x6xf32>
    %22 = arith.addf %19, %21 : vector<8x6xf32>
    %c0_17 = arith.constant 0 : index
    %c0_18 = arith.constant 0 : index
    %23 = vector.load %arg7[%c0_17, %c0_18] : memref<8x6xf32, #tpu.memory_space<vmem>>, vector<8x6xf32>
    tpu.vector_store %arg7[%c0_17, %c0_18], %22 {strides = array<i32>} : memref<8x6xf32, #tpu.memory_space<vmem>>, vector<8x6xf32>,
    return
  }
  func.func @transform_0(%arg0: i32) -> (i32, i32) {
    %c0_i32 = arith.constant 0 : i32
    %c0_i32_0 = arith.constant 0 : i32
    return %arg0, %c0_i32 : i32, i32
  }
  func.func @transform_2(%arg0: i32) -> (i32, i32) {
    %c0_i32 = arith.constant 0 : i32
    %c0_i32_0 = arith.constant 0 : i32
    %c0_i32_1 = arith.constant 0 : i32
    return %c0_i32, %c0_i32_0 : i32, i32
  }
  func.func @transform_3(%arg0: i32) -> (i32, i32) {
    %c0_i32 = arith.constant 0 : i32
    %c0_i32_0 = arith.constant 0 : i32
    %c0_i32_1 = arith.constant 0 : i32
    return %c0_i32, %c0_i32_0 : i32, i32
  }
  func.func @transform_4(%arg0: i32) -> (i32, i32) {
    %c0_i32 = arith.constant 0 : i32
    %c0_i32_0 = arith.constant 0 : i32
    %c0_i32_1 = arith.constant 0 : i32
    return %c0_i32, %c0_i32_0 : i32, i32
  }
  func.func @transform_5(%arg0: i32) -> (i32, i32) {
    %c0_i32 = arith.constant 0 : i32
    %c0_i32_0 = arith.constant 0 : i32
    %c0_i32_1 = arith.constant 0 : i32
    return %c0_i32, %c0_i32_0 : i32, i32
  }
  func.func @transform_6(%arg0: i32) -> (i32, i32) {
    %c0_i32 = arith.constant 0 : i32
    %c0_i32_0 = arith.constant 0 : i32
    return %arg0, %c0_i32 : i32, i32
  }
}

</mosaic_0001>

<bundles_post_ra>
// kernel: tpu_custom_call.1
= control target key start
LH: loop header
LB: loop body
LE: loop exit
PB: predicated region body
PF: predicated region fallthrough
CT: control target
= control target key end

     0   :  { %11 = vsyncpa [#allocation5], 0  ;;  %s456_s0 = inlined_call_operand.vmem [shape: f32[8,8], index: 0, kind: input, shape index: {}]   ;;  %s457_s1 = inlined_call_operand.vmem [shape: f32[9,64], index: 1, kind: input, shape index: {}]   ;;  %s458_s2 = inlined_call_operand.vmem [shape: bf16[8,64], index: 2, kind: input, shape index: {}]   ;;  %s459_s3 = inlined_call_operand.vmem [shape: f32[1,64], index: 3, kind: input, shape index: {}]   ;;  %s460_s4 = inlined_call_operand.vmem [shape: bf16[128,6], index: 4, kind: input, shape index: {}]   ;;  %s461_s5 = inlined_call_operand.vmem [shape: f32[1,6], index: 5, kind: input, shape index: {}]   ;;  %s462_s6 = inlined_call_operand.hbm [shape: f32[8,6], index: 6, kind: output, shape index: {}]  }
   0x1   :  { %v284_v0 = vld [vmem:[%s457_s1 + $0x1] sm:$0xff] }
   0x2   :  { %68 = vsyncadd [#allocation3], 128  ;;  %v71_v1 = vld [vmem:[%s458_s2] sm:$0xf]  ;;  %vm83_vm0 = vcmask 1043456   ;;  %v373_v2 = vmov 0.0   ;;  %v133_v13 = vpack.c.bf16 %v284_v0, %v284_v0 }
   0x3   :  { %309 = vmatprep.subr.bf16.mxu0 %v373_v2  ;;  %v85_v3 = vsel %vm83_vm0, %v71_v1, 0  ;;  %v69_v4 = vld [vmem:[%s456_s0] sm:$0xff]  ;;  %vm374_vm1 = vmmov 0   ;;  %vm79_vm2 = vcmask 64512  }
   0x4   :  { %310 = vmatpush3.bf16.msra.mxu0 %v85_v3  ;;  %311 = vmatprep.mubr.msk.bf16.mxu0 %vm374_vm1, %v373_v2  ;;  %v70_v5 = vpack.c.bf16 %v69_v4, %v69_v4  ;;  %v286_v6 = vld [vmem:[%s459_s3] ss:$0 sm:$0xff] }
   0x7   :  { %312 = vmatmul.mubr.msk.bf16.vlgmr.msra.gmra.mxu0 %vm79_vm2, %v70_v5 }
  0xc7   :  { %v121_v7 = vpop.f32.mrf.mxu0 }
  0xc8   :  { %v122_v8 = vadd.f32 %v286_v6, %v121_v7 }
  0xc9   :  { %v313_v9 = vpop.f32.mrf.mxu0 }
  0xca   :  { %339 = vtanh.f32 %v122_v8 }
  0xcb   :  { %v124_v10 = vpop.f32.mrf.mxu0 }
  0xcd   :  { %v314_v11 = vpop.f32.mrf.mxu0 }
  0xd7   :  { %v340_v12 = vpop.eup %339 }
  0xd8   :  { %369 = dma.done.wait [#allocation3], 128 }
  0xd9   :  { %370 = vsyncadd [#allocation3], 4294967168  ;;  %315 = vmatprep.subr.bf16.mxu1 %v373_v2  ;;  %331 = vmatprep.mubr.msk.bf16.mxu1 %vm374_vm1, %v373_v2  ;;  %s375_s0 = smov 64   ;;  %v341_v14 = vld [vmem:[%s460_s4 + $0x38] sm:$0xff]   ;;  %v342_v15 = vld [vmem:[%s460_s4 + $0x30] sm:$0xff]   ;;  %v131_v22 = vpack.c.bf16 %v340_v12, %v340_v12  ;;  %vm137_vm3 = vcmask 523264  }
  0xda   :  { %135 = vrot.lane.b32.xlu0 %v133_v13, %s375_s0  ;;  %316 = vmatpush3.bf16.msra.mxu1 %v341_v14  ;;  %v343_v16 = vld [vmem:[%s460_s4 + $0x28] sm:$0xff]   ;;  %v344_v17 = vld [vmem:[%s460_s4 + $0x20] sm:$0xff]   ;;  %v345_v18 = vld [vmem:[%s460_s4 + $0x18] sm:$0xff]   ;;  %s376_s20 = smov [#allocation4]   ;;  %vm253_vm4 = vcmask 48128  }
  0xdb   :  { %317 = vmatprep.subr.bf16.mxu1 %v373_v2  ;;  %v346_v19 = vld [vmem:[%s460_s4 + $0x10] sm:$0xff]   ;;  %v347_v20 = vld [vmem:[%s460_s4 + $0x8] sm:$0xff]   ;;  %v348_v21 = vld [vmem:[%s460_s4] sm:$0xff]   ;;  %s261_s21 = sshll.u32 %s376_s20, 4  ;;  %s262_s21 = int_to_ptr.vmem [resolvable:$true] %s261_s21 }
  0xdc   :  { %v288_v25 = vld [vmem:[%s461_s5] ss:$0 sm:$0xff]  ;;  %s349_s4 = scalar_lea.vmem %s262_s21, 128  ;;  %p354_p1 = scmp.lt.s32.totalorder %s262_s21, %s262_s21 }
  0xdd   :  { %p350_p0 = scmp.ne.s32.totalorder %s262_s21, %s349_s4  ;;  %p355_p2 = scmp.lt.s32.totalorder %s349_s4, %s349_s4 }
  0xde   :  { %318 = vmatpush3.bf16.msra.mxu1 %v342_v15 }
  0xdf   :  { %319 = vmatprep.subr.bf16.mxu1 %v373_v2  ;;  %p356_p3 = por %p355_p2, %p354_p1 }
  0xe1   :  { %p357_p4 = pnand %p356_p3, %p350_p0 }
  0xe2   :  { %320 = vmatpush3.bf16.msra.mxu1 %v343_v16 }
  0xe3   :  { %321 = vmatprep.subr.bf16.mxu1 %v373_v2 }
  0xe6   :  { %322 = vmatpush3.bf16.msra.mxu1 %v344_v17 }
  0xe7   :  { %323 = vmatprep.subr.bf16.mxu1 %v373_v2 }
  0xea   :  { %324 = vmatpush3.bf16.msra.mxu1 %v345_v18 }
  0xeb   :  { %325 = vmatprep.subr.bf16.mxu1 %v373_v2 }
  0xee   :  { %326 = vmatpush3.bf16.msra.mxu1 %v346_v19 }
  0xef   :  { %327 = vmatprep.subr.bf16.mxu1 %v373_v2 }
  0xf2   :  { %328 = vmatpush3.bf16.msra.mxu1 %v347_v20 }
  0xf3   :  { %329 = vmatprep.subr.bf16.mxu1 %v373_v2 }
  0xf6   :  { %330 = vmatpush3.bf16.msra.mxu1 %v348_v21 }
 0x14c   :  { %v136_v23 = vpop.permute.xlu0 %135 }
 0x14d   :  { %v140_v24 = vsel %vm137_vm3, %v131_v22, %v136_v23 }
 0x14e   :  { %332 = vmatmul.mubr.bf16.vlgmr.msra.gmra.mxu1 %v140_v24 }
 0x20e   :  { %v247_v26 = vpop.f32.mrf.mxu1 }
 0x20f   :  { %v248_v27 = vadd.f32 %v288_v25, %v247_v26 }
 0x210   :  { %v333_v28 = vpop.f32.mrf.mxu1 }
 0x211   :  { %254 = vst.msk [vmem:[#allocation4] sm:$0xff] %vm253_vm4, %v248_v27 }
 0x212   :  { %v250_v29 = vpop.f32.mrf.mxu1 }
 0x213   :  { %360 = shalt.err (!%p357_p4)
}
 0x214   :  { %264 = dma.vmem_to_hbm [thread:$0]  %s262_s21, 128, %s462_s6, [#allocation5]   ;;  %v334_v30 = vpop.f32.mrf.mxu1 }
 0x215   :  { %371 = dma.done.wait [#allocation5], 128  }
 0x216   :  { %372 = vsyncadd [#allocation5], 4294967168 }
 0x217   :  { %268 = vsyncpa [#allocation5], 1 }
 0x218   :  { %269 = vsyncmov [#allocation3] }
 0x21b   :  { %s270_s5 = vpop.sfrf %269 }
 0x21c   :  { %p297_p5 = scmp.ne.s32.totalorder %s270_s5, 0 }
 0x21e   :  { %274 = shalt.err (%p297_p5)  }

</bundles_post_ra>
